<compile_context>
chip_gen: v6e
topology: v6e:2x2x1
jax: 0.10.0
libtpu: 0.0.40
codegen_flags: <defaults>
</compile_context>

<pallas_src>
import jax
import jax.numpy as jnp
from jax.experimental import pallas as pl
from jax.experimental.pallas import tpu as pltpu


def _round_up(x, m):
    return ((x + m - 1) // m) * m


def _cdiv(a, b):
    return -(-a // b)


def _vmem_capacity_bytes():
    try:
        return int(pltpu.get_tpu_info().vmem_capacity_bytes)
    except Exception:
        return 64 * 1024 * 1024  # conservative fallback: v7x per-TC VMEM


def _resident_spec(shape):
    """Constant-index block: fetched once, kept resident, single-buffered."""
    idx = lambda i: (0, 0)
    if hasattr(pl, "Buffered"):
        try:
            return pl.BlockSpec(shape, idx, pipeline_mode=pl.Buffered(1))
        except TypeError:  # jax version without the pipeline_mode kwarg
            pass
    return pl.BlockSpec(shape, idx)


def mlp_kernel(x_ref, w1_ref, b1_ref, w2_ref, b2_ref, o_ref):
    # Hidden layer on the MXU, f32 accumulation.  x tile is cast in-kernel to
    # the weight operand dtype (free VPU op) so the wrapper never re-writes x.
    h = jnp.dot(x_ref[...].astype(w1_ref.dtype), w1_ref[...],
                preferred_element_type=jnp.float32)
    # Bias + ReLU in f32 on the VPU (b1 is (1, H): broadcasts over sublanes).
    h = jnp.maximum(h + b1_ref[...], 0.0)
    # Output layer on the MXU.
    y = jnp.dot(h.astype(w2_ref.dtype), w2_ref[...],
                preferred_element_type=jnp.float32)
    y = y + b2_ref[...]
    o_ref[...] = y.astype(o_ref.dtype)


def prepare_params(w1, b1, w2, b2, *, mxu_dtype=None):
    """One-time weight preparation (hoisted out of the per-call forward).

    w1: (entrada, oculta); b1: (1, oculta) or (oculta,);
    w2: (oculta, salida);  b2: (1, salida) or (salida,).
    Weights are stored transposed relative to PyTorch nn.Linear ((in, out)).
    mxu_dtype=jnp.bfloat16 selects the native-rate MXU operand path.
    """
    entrada, oculta = w1.shape
    salida = w2.shape[1]
    wd = jnp.dtype(mxu_dtype) if mxu_dtype is not None else jnp.dtype(w1.dtype)

    w1p = w1.astype(wd)
    b1p = jnp.reshape(b1, (1, oculta)).astype(jnp.float32)

    if salida >= 128 and salida % 128 != 0:
        # Only pad the output feature dim when it is big AND misaligned.
        Np = _round_up(salida, 128)
        w2p = jnp.zeros((oculta, Np), wd).at[:, :salida].set(w2.astype(wd))
        b2p = jnp.zeros((1, Np), jnp.float32).at[:, :salida].set(
            jnp.reshape(b2, (1, salida)).astype(jnp.float32))
    else:
        w2p = w2.astype(wd)
        b2p = jnp.reshape(b2, (1, salida)).astype(jnp.float32)
    return w1p, b1p, w2p, b2p


def red_neuronal_forward(x, w1, b1, w2, b2, *, salida=None, block_m=None,
                         vmem_limit_bytes=None):
    """x: (B, entrada); prepared params from prepare_params() -> (B, salida)."""
    B, entrada = x.shape
    oculta = w1.shape[1]
    Np = w2.shape[1]            # possibly padded output feature dim
    if salida is None:
        salida = Np
    out_dtype = x.dtype

    x_isz = jnp.dtype(x.dtype).itemsize
    w_isz = jnp.dtype(w1.dtype).itemsize
    o_isz = jnp.dtype(out_dtype).itemsize
    sub = 8 if x_isz >= 4 else 32 // x_isz   # sublane multiple for x/out tiles

    # ---- batch tile: near-divisor of B, >=2 grid steps when B allows -------
    if block_m is None:
        n_tiles = _cdiv(B, 512)
        if B >= 2 * sub:           # v7x has 2 TCs; >=2 steps lets both work
            n_tiles = max(n_tiles, 2)
        block_m = _round_up(_cdiv(B, n_tiles), sub)
    else:
        block_m = max(sub, _round_up(block_m, sub))

    # ---- per-generation VMEM budget ----------------------------------------
    def vmem_estimate(bm):
        xbytes = 2 * bm * entrada * x_isz          # double-buffered x tile
        obytes = 2 * bm * Np * o_isz               # double-buffered out tile
        wbytes = (entrada * oculta + oculta * Np) * w_isz + (oculta + Np) * 4
        hbytes = bm * oculta * 4                   # f32 hidden intermediate
        return xbytes + obytes + wbytes + hbytes

    cap = _vmem_capacity_bytes()
    if vmem_limit_bytes is None:
        vmem_limit_bytes = max(32 * 1024 * 1024, (cap * 3) // 4)
    budget = max(8 * 1024 * 1024, vmem_limit_bytes - 8 * 1024 * 1024)
    while block_m > sub and vmem_estimate(block_m) > budget:
        block_m = max(sub, _round_up(block_m // 2, sub))
    # TODO(synk): if resident W1/W2 alone blow the budget (huge entrada/oculta,
    # especially under v7x's 64 MiB VMEM), restructure to a K/H reduction grid
    # axis marked "arbitrary" with an f32 accumulator scratch instead of only
    # shrinking the batch tile.

    Bp = _round_up(B, block_m)
    xp = x if Bp == B else jnp.zeros((Bp, entrada), x.dtype).at[:B].set(x)

    flops = 2 * Bp * (entrada * oculta + oculta * Np)
    bytes_accessed = (Bp * entrada * x_isz
                      + (entrada * oculta + oculta * Np) * w_isz
                      + (oculta + Np) * 4
                      + Bp * Np * o_isz)

    out_p = pl.pallas_call(
        mlp_kernel,
        out_shape=jax.ShapeDtypeStruct((Bp, Np), out_dtype),
        grid=(Bp // block_m,),
        in_specs=[
            pl.BlockSpec((block_m, entrada), lambda i: (i, 0)),  # x tile, pipelined
            _resident_spec((entrada, oculta)),                   # W1 resident
            _resident_spec((1, oculta)),                         # b1 resident
            _resident_spec((oculta, Np)),                        # W2 resident
            _resident_spec((1, Np)),                             # b2 resident
        ],
        out_specs=pl.BlockSpec((block_m, Np), lambda i: (i, 0)),
        compiler_params=pltpu.CompilerParams(
            dimension_semantics=("parallel",),
            vmem_limit_bytes=int(vmem_limit_bytes),
        ),
        cost_estimate=pl.CostEstimate(
            flops=flops, transcendentals=0, bytes_accessed=bytes_accessed),
    )(xp, w1, b1, w2, b2)

    if Bp != B or Np != salida:
        out_p = out_p[:B, :salida]
    return out_p


def init_params(key, entrada, oculta, salida, dtype=jnp.float32):
    """Deterministic init mirroring nn.Linear: U(-1/sqrt(fan_in), 1/sqrt(fan_in)).
    Weights stored transposed relative to PyTorch ((in, out) instead of (out, in))."""
    k1, k2, k3, k4 = jax.random.split(key, 4)
    bound1 = 1.0 / jnp.sqrt(entrada)
    bound2 = 1.0 / jnp.sqrt(oculta)
    w1 = jax.random.uniform(k1, (entrada, oculta), dtype, -bound1, bound1)
    b1 = jax.random.uniform(k2, (1, oculta), dtype, -bound1, bound1)
    w2 = jax.random.uniform(k3, (oculta, salida), dtype, -bound2, bound2)
    b2 = jax.random.uniform(k4, (1, salida), dtype, -bound2, bound2)
    return w1, b1, w2, b2


if __name__ == "__main__":
    # Small shapes consistent with RedNeuronal(entrada, oculta, salida).
    batch, entrada, oculta, salida = 8, 32, 64, 16

    key = jax.random.PRNGKey(0)
    kx, kp = jax.random.split(key)
    x = jax.random.normal(kx, (batch, entrada), dtype=jnp.float32)
    w1, b1, w2, b2 = init_params(kp, entrada, oculta, salida)

    fwd = jax.jit(red_neuronal_forward,
                  static_argnames=("salida", "block_m", "vmem_limit_bytes"))

    # Pure-JAX reference of the same forward pass.
    ref = jnp.maximum(x @ w1 + b1, 0.0) @ w2 + b2

    # f32 MXU operand path (exact-ish): tight tolerance.
    p32 = prepare_params(w1, b1, w2, b2)
    out = jax.block_until_ready(fwd(x, *p32, salida=salida))
    assert out.shape == (batch, salida)
    assert jnp.allclose(out, ref, atol=1e-5, rtol=1e-5)

    # bf16 MXU operand path (production default per perf review): looser tol.
    pbf = prepare_params(w1, b1, w2, b2, mxu_dtype=jnp.bfloat16)
    out_bf = jax.block_until_ready(fwd(x, *pbf, salida=salida))
    assert out_bf.shape == (batch, salida)
    assert jnp.allclose(out_bf, ref, atol=5e-2, rtol=5e-2)

    print("KERNEL_OK")
</pallas_src>

<mosaic_0001>
module attributes {stable_mosaic.version = 11 : i64} {
  func.func @mlp_kernel(%arg0: i32, %arg1: memref<8x32xf32, #tpu.memory_space<vmem>>, %arg2: memref<32x64xf32, #tpu.memory_space<vmem>>, %arg3: memref<1x64xf32, #tpu.memory_space<vmem>>, %arg4: memref<64x16xf32, #tpu.memory_space<vmem>>, %arg5: memref<1x16xf32, #tpu.memory_space<vmem>>, %arg6: memref<8x16xf32, #tpu.memory_space<vmem>>) attributes {dimension_semantics = [#tpu.dimension_semantics<parallel>], iteration_bounds = array<i64: 1>, scalar_prefetch = 0 : i64, scratch_operands = 0 : i64, tpu.core_type = #tpu.core_type<tc>, window_params = [{transform_indices = @transform_0, window_bounds = array<i64: 8, 32>}, {pipeline_mode = #tpu.pipeline_mode<synchronous>, transform_indices = @transform_1, window_bounds = array<i64: 32, 64>}, {pipeline_mode = #tpu.pipeline_mode<synchronous>, transform_indices = @transform_2, window_bounds = array<i64: 1, 64>}, {pipeline_mode = #tpu.pipeline_mode<synchronous>, transform_indices = @transform_3, window_bounds = array<i64: 64, 16>}, {pipeline_mode = #tpu.pipeline_mode<synchronous>, transform_indices = @transform_4, window_bounds = array<i64: 1, 16>}, {transform_indices = @transform_5, window_bounds = array<i64: 8, 16>}]} {
    %c0 = arith.constant 0 : index
    %c0_0 = arith.constant 0 : index
    %0 = vector.load %arg1[%c0, %c0_0] : memref<8x32xf32, #tpu.memory_space<vmem>>, vector<8x32xf32>
    %c0_1 = arith.constant 0 : index
    %c0_2 = arith.constant 0 : index
    %1 = vector.load %arg2[%c0_1, %c0_2] : memref<32x64xf32, #tpu.memory_space<vmem>>, vector<32x64xf32>
    %cst = arith.constant dense<0.000000e+00> : vector<8x64xf32>
    %2 = tpu.matmul %0, %1, %cst {dimension_numbers = #tpu.dot_dimension_numbers<[1], [0], [0], [1], [0, 0, 1, 1], [], []>} : vector<8x32xf32>, vector<32x64xf32>, vector<8x64xf32> -> vector<8x64xf32>
    %c0_3 = arith.constant 0 : index
    %c0_4 = arith.constant 0 : index
    %3 = vector.load %arg3[%c0_3, %c0_4] : memref<1x64xf32, #tpu.memory_space<vmem>>, vector<1x64xf32>
    %4 = vector.broadcast %3 : vector<1x64xf32> to vector<8x64xf32>
    %5 = arith.addf %2, %4 : vector<8x64xf32>
    %cst_5 = arith.constant 0.000000e+00 : f32
    %6 = vector.broadcast %cst_5 : f32 to vector<8x64xf32>
    %7 = arith.maximumf %5, %6 : vector<8x64xf32>
    %c0_6 = arith.constant 0 : index
    %c0_7 = arith.constant 0 : index
    %8 = vector.load %arg4[%c0_6, %c0_7] : memref<64x16xf32, #tpu.memory_space<vmem>>, vector<64x16xf32>
    %cst_8 = arith.constant dense<0.000000e+00> : vector<8x16xf32>
    %9 = tpu.matmul %7, %8, %cst_8 {dimension_numbers = #tpu.dot_dimension_numbers<[1], [0], [0], [1], [0, 0, 1, 1], [], []>} : vector<8x64xf32>, vector<64x16xf32>, vector<8x16xf32> -> vector<8x16xf32>
    %c0_9 = arith.constant 0 : index
    %c0_10 = arith.constant 0 : index
    %10 = vector.load %arg5[%c0_9, %c0_10] : memref<1x16xf32, #tpu.memory_space<vmem>>, vector<1x16xf32>
    %11 = vector.broadcast %10 : vector<1x16xf32> to vector<8x16xf32>
    %12 = arith.addf %9, %11 : vector<8x16xf32>
    %c0_11 = arith.constant 0 : index
    %c0_12 = arith.constant 0 : index
    %13 = vector.load %arg6[%c0_11, %c0_12] : memref<8x16xf32, #tpu.memory_space<vmem>>, vector<8x16xf32>
    tpu.vector_store %arg6[%c0_11, %c0_12], %12 {strides = array<i32>} : memref<8x16xf32, #tpu.memory_space<vmem>>, vector<8x16xf32>,
    return
  }
  func.func @transform_0(%arg0: i32) -> (i32, i32) {
    %c0_i32 = arith.constant 0 : i32
    %c0_i32_0 = arith.constant 0 : i32
    return %arg0, %c0_i32 : i32, i32
  }
  func.func @transform_1(%arg0: i32) -> (i32, i32) {
    %c0_i32 = arith.constant 0 : i32
    %c0_i32_0 = arith.constant 0 : i32
    %c0_i32_1 = arith.constant 0 : i32
    return %c0_i32, %c0_i32_0 : i32, i32
  }
  func.func @transform_2(%arg0: i32) -> (i32, i32) {
    %c0_i32 = arith.constant 0 : i32
    %c0_i32_0 = arith.constant 0 : i32
    %c0_i32_1 = arith.constant 0 : i32
    return %c0_i32, %c0_i32_0 : i32, i32
  }
  func.func @transform_3(%arg0: i32) -> (i32, i32) {
    %c0_i32 = arith.constant 0 : i32
    %c0_i32_0 = arith.constant 0 : i32
    %c0_i32_1 = arith.constant 0 : i32
    return %c0_i32, %c0_i32_0 : i32, i32
  }
  func.func @transform_4(%arg0: i32) -> (i32, i32) {
    %c0_i32 = arith.constant 0 : i32
    %c0_i32_0 = arith.constant 0 : i32
    %c0_i32_1 = arith.constant 0 : i32
    return %c0_i32, %c0_i32_0 : i32, i32
  }
  func.func @transform_5(%arg0: i32) -> (i32, i32) {
    %c0_i32 = arith.constant 0 : i32
    %c0_i32_0 = arith.constant 0 : i32
    return %arg0, %c0_i32 : i32, i32
  }
}

</mosaic_0001>

<bundles_post_ra>
// kernel: red_neuronal_forward.1
= control target key start
LH: loop header
LB: loop body
LE: loop exit
PB: predicated region body
PF: predicated region fallthrough
CT: control target
= control target key end

     0   :  { %v286_v1 = vmov 0.0   ;;  %vm287_vm0 = vmmov 0   ;;  %s369_s0 = inlined_call_operand.vmem [shape: f32[8,32], index: 0, kind: input, shape index: {}]   ;;  %s370_s1 = inlined_call_operand.vmem [shape: f32[32,64], index: 1, kind: input, shape index: {}]   ;;  %s371_s2 = inlined_call_operand.vmem [shape: f32[1,64], index: 2, kind: input, shape index: {}]   ;;  %s372_s3 = inlined_call_operand.vmem [shape: f32[64,16], index: 3, kind: input, shape index: {}]   ;;  %s373_s4 = inlined_call_operand.vmem [shape: f32[1,16], index: 4, kind: input, shape index: {}]   ;;  %s374_s5 = inlined_call_operand.hbm [shape: f32[8,16], index: 5, kind: output, shape index: {}]  }
   0x1   :  { %v25_v0 = vld [vmem:[%s370_s1 + $0x18] sm:$0xff]  ;;  %231 = vmatprep.subr.mxu0 %v286_v1  ;;  %v24_v2 = vld [vmem:[%s370_s1 + $0x10] sm:$0xff]  ;;  %239 = vmatprep.mubr.msk.f32.mxu0 %vm287_vm0, %v286_v1  ;;  %v23_v5 = vld [vmem:[%s370_s1 + $0x8] sm:$0xff] }
   0x2   :  { %v115_v3 = vld [vmem:[%s372_s3 + $0x38] sm:$0xff]  ;;  %232 = vmatpush3.msra.mxu0 %v25_v0  ;;  %242 = vmatprep.subr.mxu1 %v286_v1  ;;  %v114_v4 = vld [vmem:[%s372_s3 + $0x30] sm:$0xff] }
   0x3   :  { %233 = vmatprep.subr.mxu0 %v286_v1  ;;  %243 = vmatpush3.msra.mxu1 %v115_v3 }
   0x4   :  { %10 = vsyncpa [#allocation3], 0  ;;  %234 = vmatpush3.msra.mxu0 %v24_v2  ;;  %244 = vmatprep.subr.mxu1 %v286_v1  ;;  %v113_v6 = vld [vmem:[%s372_s3 + $0x28] sm:$0xff]  ;;  %v22_v7 = vld [vmem:[%s370_s1] sm:$0xff]  ;;  %vm33_vm1 = vcmask 261120   ;;  %vm123_vm2 = vcmask 523264  }
   0x5   :  { %235 = vmatprep.subr.mxu0 %v286_v1  ;;  %245 = vmatpush3.msra.mxu1 %v114_v4  ;;  %v21_v8 = vld [vmem:[%s369_s0] sm:$0xff]  ;;  %v111_v10 = vld [vmem:[%s372_s3 + $0x18] sm:$0xff]  ;;  %v110_v11 = vld [vmem:[%s372_s3 + $0x10] sm:$0xff]  ;;  %s288_s21 = smov [#allocation2]   ;;  %vm197_vm3 = vcmask 130048  }
   0x6   :  { %236 = vmatpush3.msra.mxu0 %v23_v5  ;;  %246 = vmatprep.subr.mxu1 %v286_v1  ;;  %v112_v9 = vld [vmem:[%s372_s3 + $0x20] sm:$0xff]  ;;  %v109_v12 = vld [vmem:[%s372_s3 + $0x8] sm:$0xff]  ;;  %s205_s22 = sshll.u32 %s288_s21, 4  ;;  %s206_s22 = int_to_ptr.vmem [resolvable:$true] %s205_s22 }
   0x7   :  { %237 = vmatprep.subr.mxu0 %v286_v1  ;;  %247 = vmatpush3.msra.mxu1 %v113_v6  ;;  %v108_v13 = vld [vmem:[%s372_s3] sm:$0xff]  ;;  %s264_s3 = scalar_lea.vmem %s206_s22, 128  ;;  %p269_p1 = scmp.lt.s32.totalorder %s206_s22, %s206_s22 }
   0x8   :  { %238 = vmatpush3.msra.mxu0 %v22_v7  ;;  %248 = vmatprep.subr.mxu1 %v286_v1  ;;  %v213_v14 = vld [vmem:[%s371_s2] ss:$0 sm:$0xff]  ;;  %p265_p0 = scmp.ne.s32.totalorder %s206_s22, %s264_s3  ;;  %p270_p2 = scmp.lt.s32.totalorder %s264_s3, %s264_s3 }
   0x9   :  { %240 = vmatmul.mubr.msk.f32.vlgmr.msra.gmra.mxu0 %vm33_vm1, %v21_v8  ;;  %249 = vmatpush3.msra.mxu1 %v112_v9  ;;  %v215_v19 = vld [vmem:[%s373_s4] ss:$0 sm:$0xff] }
   0xa   :  { %250 = vmatprep.subr.mxu1 %v286_v1  ;;  %258 = vmatprep.mubr.msk.f32.mxu1 %vm287_vm0, %v286_v1  ;;  %p271_p3 = por %p270_p2, %p269_p1 }
   0xb   :  { %251 = vmatpush3.msra.mxu1 %v111_v10 }
   0xc   :  { %252 = vmatprep.subr.mxu1 %v286_v1  ;;  %p272_p4 = pnand %p271_p3, %p265_p0 }
   0xd   :  { %253 = vmatpush3.msra.mxu1 %v110_v11 }
   0xe   :  { %254 = vmatprep.subr.mxu1 %v286_v1 }
   0xf   :  { %255 = vmatpush3.msra.mxu1 %v109_v12 }
  0x10   :  { %256 = vmatprep.subr.mxu1 %v286_v1 }
  0x11   :  { %257 = vmatpush3.msra.mxu1 %v108_v13 }
  0xc9   :  { %v103_v15 = vpop.f32.mrf.mxu0 }
  0xca   :  { %v104_v16 = vadd.f32 %v213_v14, %v103_v15 }
  0xcb   :  { %v241_v17 = vpop.f32.mrf.mxu0 }
  0xcc   :  { %v107_v18 = vmax.f32 %v104_v16, 0.0 }
  0xce   :  { %259 = vmatmul.mubr.msk.f32.vlgmr.msra.gmra.mxu1 %vm123_vm2, %v107_v18 }
 0x18e   :  { %v193_v20 = vpop.f32.mrf.mxu1 }
 0x18f   :  { %v194_v21 = vadd.f32 %v215_v19, %v193_v20 }
 0x190   :  { %v260_v22 = vpop.f32.mrf.mxu1 }
 0x191   :  { %198 = vst.msk [vmem:[#allocation2] sm:$0xff] %vm197_vm3, %v194_v21 }
 0x192   :  { %275 = shalt.err (!%p272_p4)
}
 0x193   :  { %208 = dma.vmem_to_hbm [thread:$0]  %s206_s22, 128, %s374_s5, [#allocation3]  }
 0x194   :  { %284 = dma.done.wait [#allocation3], 128  }
 0x195   :  { %285 = vsyncadd [#allocation3], 4294967168 }
 0x196   :  { %212 = vsyncpa [#allocation3], 1 }

</bundles_post_ra>
